<compile_context>
chip_gen: v5e
topology: v5e:2x2
jax: 0.10.0
libtpu: 0.0.40
codegen_flags: <defaults>
</compile_context>

<pallas_src>
import numpy as np
import jax
import jax.numpy as jnp
from jax.experimental import pallas as pl
from jax.experimental.pallas import tpu as pltpu


# ----------------------------------------------------------------------------
# Dense operator matrices (plain numpy glue; exact PyTorch semantics)
# ----------------------------------------------------------------------------
def _adaptive_avg_pool_matrix(in_size: int, out_size: int) -> np.ndarray:
    """P[i, h] such that pooled[i] = sum_h P[i, h] * x[h]  (AdaptiveAvgPool1d)."""
    P = np.zeros((out_size, in_size), dtype=np.float32)
    for i in range(out_size):
        start = (i * in_size) // out_size
        end = -((-(i + 1) * in_size) // out_size)  # ceil((i+1)*in/out)
        P[i, start:end] = 1.0 / float(end - start)
    return P


def _bilinear_matrix_align_corners(out_size: int, in_size: int) -> np.ndarray:
    """R[p, i] such that up[p] = sum_i R[p, i] * z[i]  (bilinear, align_corners=True)."""
    R = np.zeros((out_size, in_size), dtype=np.float32)
    if in_size == 1:
        R[:, 0] = 1.0
        return R
    for p in range(out_size):
        src = 0.0 if out_size == 1 else p * (in_size - 1) / (out_size - 1)
        i0 = min(int(np.floor(src)), in_size - 1)
        i1 = min(i0 + 1, in_size - 1)
        frac = src - i0
        R[p, i0] += 1.0 - frac
        R[p, i1] += frac
    return R


# ----------------------------------------------------------------------------
# Fused Pallas kernel: ALL pyramid branches, one batch element per grid step
# ----------------------------------------------------------------------------
def _make_fused_ppm_kernel(C_in: int, C_total: int):
    """Kernel factory; channel split (C_in vs branch slab) is static."""

    def kernel(x_ref, p2t_ref, w_ref, shift_ref, mask_ref, r_ref, o_ref):
        # x block: (1, C_in, HW) f32
        x = x_ref[0]                                              # (C_in, HW)

        # Identity branch of the concat: copy x (f32, bit-exact) into the
        # first C_in channels of the output block.
        o_ref[0, 0:C_in, :] = x.astype(o_ref.dtype)

        # (1) Adaptive average pooling for ALL bins in one bf16 MXU pass.
        pooled_all = jnp.dot(x.astype(jnp.bfloat16), p2t_ref[...],
                             preferred_element_type=jnp.float32)   # (C_in, sum_bb)

        # (2) Stacked 1x1 conv (BN scale pre-folded into W_stack), one MXU pass
        #     over the concatenated pooled tile of all branches.
        y_all = jnp.dot(w_ref[...], pooled_all.astype(jnp.bfloat16),
                        preferred_element_type=jnp.float32)        # (kC, sum_bb)

        # (3) BN shift + ReLU, THEN block-diagonal mask to zero cross-branch
        #     (row of branch i) x (column of bin j != i) terms.
        z_all = jnp.maximum(y_all + shift_ref[...], 0.0) * mask_ref[...]

        # (4) Stacked bilinear upsample (align_corners=True) back to HW for all
        #     branches in one MXU pass; masked entries contribute exactly 0.
        up_all = jnp.dot(z_all.astype(jnp.bfloat16), r_ref[...],
                         preferred_element_type=jnp.float32)       # (kC, HW)

        # Single lane-dense store of the whole branch slab.
        o_ref[0, C_in:C_total, :] = up_all.astype(o_ref.dtype)

    return kernel


def pyramid_pooling_module_forward(x, params):
    """x: (N, C_in, H, W) NCHW, matches PyTorch.  Returns (N, C_in + k*C_out, H, W)."""
    N, C_in, H, W = x.shape
    HW = H * W

    p2t = params["p2t_all_bf16"]        # (HW, sum_bb)   bf16
    w_stack = params["w_stack_bf16"]    # (kC, C_in)     bf16 (BN scale folded in)
    shift = params["shift_stack"]       # (kC, 1)        f32
    mask = params["mask"]               # (kC, sum_bb)   f32 block-diagonal 0/1
    r_stack = params["r_stack_bf16"]    # (sum_bb, HW)   bf16

    kC = int(w_stack.shape[0])
    sum_bb = int(p2t.shape[1])
    C_total = C_in + kC

    x_flat = x.reshape(N, C_in, HW)

    in_specs = [
        pl.BlockSpec((1, C_in, HW), lambda n: (n, 0, 0)),     # x: one batch elt / step
        pl.BlockSpec((HW, sum_bb), lambda n: (0, 0)),         # concatenated pooling op
        pl.BlockSpec((kC, C_in), lambda n: (0, 0)),           # stacked (scale-folded) conv W
        pl.BlockSpec((kC, 1), lambda n: (0, 0)),              # stacked BN shift
        pl.BlockSpec((kC, sum_bb), lambda n: (0, 0)),         # block-diagonal branch mask
        pl.BlockSpec((sum_bb, HW), lambda n: (0, 0)),         # stacked bilinear upsample op
    ]

    # Advisory cost hint for XLA's scheduler around the custom call.
    flops = N * (2 * C_in * HW * sum_bb
                 + 2 * kC * C_in * sum_bb
                 + 2 * kC * sum_bb * HW)
    bytes_accessed = (x_flat.size * 4 + p2t.size * 2 + w_stack.size * 2
                      + shift.size * 4 + mask.size * 4 + r_stack.size * 2
                      + N * C_total * HW * 4)

    # TODO(synk): production-scale PSPNet (C_in~2048, HW~3600, C_total~4096) needs a
    # two-phase HW/C_in-tiled variant (pooled accumulator in VMEM over an "arbitrary"
    # reduction axis, per-HW-tile output emission, single-buffered constant operands)
    # to fit v7x's 64 MiB VMEM; not implemented at these demo shapes.
    out = pl.pallas_call(
        _make_fused_ppm_kernel(C_in, C_total),
        out_shape=jax.ShapeDtypeStruct((N, C_total, HW), jnp.float32),
        grid_spec=pltpu.PrefetchScalarGridSpec(
            num_scalar_prefetch=0,
            grid=(N,),
            in_specs=in_specs,
            out_specs=pl.BlockSpec((1, C_total, HW), lambda n: (n, 0, 0)),
        ),
        compiler_params=pltpu.CompilerParams(
            dimension_semantics=("parallel",),
            vmem_limit_bytes=32 * 1024 * 1024,
        ),
        cost_estimate=pl.CostEstimate(
            flops=flops, transcendentals=0, bytes_accessed=bytes_accessed),
    )(x_flat, p2t, w_stack, shift, mask, r_stack)

    return out.reshape(N, C_total, H, W)


# ----------------------------------------------------------------------------
# Parameter construction (deterministic, synthetic)
# ----------------------------------------------------------------------------
def init_ppm_params(key, in_channels, out_channels, bin_sizes, H, W):
    eps = 1e-5
    branches = []
    p2t_cols, w_rows, shift_rows, r_rows = [], [], [], []

    for i, b in enumerate(bin_sizes):
        kw, kg, kb, km, kv = jax.random.split(jax.random.fold_in(key, i), 5)
        w = 0.1 * jax.random.normal(kw, (out_channels, in_channels), jnp.float32)
        gamma = 1.0 + 0.1 * jax.random.normal(kg, (out_channels,), jnp.float32)
        beta = 0.1 * jax.random.normal(kb, (out_channels,), jnp.float32)
        running_mean = 0.1 * jax.random.normal(km, (out_channels,), jnp.float32)
        running_var = 1.0 + 0.5 * jax.random.uniform(kv, (out_channels,), jnp.float32)
        scale = gamma / jnp.sqrt(running_var + eps)
        shift = beta - running_mean * scale
        # Fold BN scale into the conv weight (mathematically identical).
        w_folded = scale[:, None] * w

        # Pooling / upsampling operator matrices (exact adaptive-pool & bilinear).
        Ph = _adaptive_avg_pool_matrix(H, b)
        Pw = _adaptive_avg_pool_matrix(W, b)
        Rh = _bilinear_matrix_align_corners(H, b)
        Rw = _bilinear_matrix_align_corners(W, b)
        p2t = np.kron(Ph, Pw).T.astype(np.float32)    # (H*W, b*b)
        r2t = np.kron(Rh, Rw).T.astype(np.float32)    # (b*b, H*W)

        p2t_cols.append(p2t)
        w_rows.append(np.asarray(w_folded, dtype=np.float32))
        shift_rows.append(np.asarray(shift, dtype=np.float32).reshape(out_channels, 1))
        r_rows.append(r2t)

        # Per-branch f32 copies for the pure-JAX reference path.
        branches.append(dict(
            w=w_folded,
            shift=shift.reshape(out_channels, 1),
            p2t=jnp.asarray(p2t),
            r2t=jnp.asarray(r2t),
        ))

    # Stacked kernel operands.
    p2t_all = np.concatenate(p2t_cols, axis=1)        # (H*W, sum_bb)
    w_stack = np.concatenate(w_rows, axis=0)          # (k*C_out, C_in)
    shift_stack = np.concatenate(shift_rows, axis=0)  # (k*C_out, 1)
    r_stack = np.concatenate(r_rows, axis=0)          # (sum_bb, H*W)

    # Block-diagonal 0/1 mask: branch i's output rows only see bin i's columns.
    kC = len(bin_sizes) * out_channels
    sum_bb = p2t_all.shape[1]
    mask = np.zeros((kC, sum_bb), dtype=np.float32)
    off = 0
    for i, b in enumerate(bin_sizes):
        bb = int(b) * int(b)
        mask[i * out_channels:(i + 1) * out_channels, off:off + bb] = 1.0
        off += bb

    return dict(
        p2t_all_bf16=jnp.asarray(p2t_all, dtype=jnp.bfloat16),
        w_stack_bf16=jnp.asarray(w_stack, dtype=jnp.bfloat16),
        shift_stack=jnp.asarray(shift_stack, dtype=jnp.float32),
        mask=jnp.asarray(mask, dtype=jnp.float32),
        r_stack_bf16=jnp.asarray(r_stack, dtype=jnp.bfloat16),
        branches=branches,
    )


# Pure-JAX f32 reference (per-branch loop, no mask trick, no Pallas).
def _reference_forward(x, params):
    N, C_in, H, W = x.shape
    x_flat = x.reshape(N, C_in, H * W)
    outs = [x]
    for br in params["branches"]:
        pooled = jnp.einsum("ncs,sb->ncb", x_flat, br["p2t"])
        y = jnp.einsum("oc,ncb->nob", br["w"], pooled)
        z = jnp.maximum(y + br["shift"][None], 0.0)
        up = jnp.einsum("nob,bs->nos", z, br["r2t"])
        outs.append(up.reshape(N, -1, H, W))
    return jnp.concatenate(outs, axis=1)


if __name__ == "__main__":
    N, C_in, H, W = 2, 4, 16, 16
    C_out = 8
    bin_sizes = (1, 2, 3, 6)

    key = jax.random.PRNGKey(0)
    kx, kp = jax.random.split(key)
    x = jax.random.normal(kx, (N, C_in, H, W), jnp.float32)
    params = init_ppm_params(kp, C_in, C_out, bin_sizes, H, W)

    out = pyramid_pooling_module_forward(x, params)
    out = jax.block_until_ready(out)

    expected_channels = C_in + len(bin_sizes) * C_out
    assert out.shape == (N, expected_channels, H, W), out.shape

    ref = jax.block_until_ready(_reference_forward(x, params))

    # Identity/passthrough channels stay in f32 end-to-end -> bit-exact.
    np.testing.assert_array_equal(np.asarray(out[:, :C_in]), np.asarray(x))
    # Branch channels: bf16 MXU inputs with f32 accumulation -> loosened tolerance.
    np.testing.assert_allclose(np.asarray(out), np.asarray(ref), atol=2e-2, rtol=2e-2)

    print("KERNEL_OK")
</pallas_src>

<mosaic_0001>
module attributes {stable_mosaic.version = 11 : i64} {
  func.func @kernel(%arg0: i32, %arg1: memref<1x4x256xf32, #tpu.memory_space<vmem>>, %arg2: memref<256x50xbf16, #tpu.memory_space<vmem>>, %arg3: memref<32x4xbf16, #tpu.memory_space<vmem>>, %arg4: memref<32x1xf32, #tpu.memory_space<vmem>>, %arg5: memref<32x50xf32, #tpu.memory_space<vmem>>, %arg6: memref<50x256xbf16, #tpu.memory_space<vmem>>, %arg7: memref<1x36x256xf32, #tpu.memory_space<vmem>>) attributes {dimension_semantics = [#tpu.dimension_semantics<parallel>], iteration_bounds = array<i64: 2>, scalar_prefetch = 0 : i64, scratch_operands = 0 : i64, tpu.core_type = #tpu.core_type<tc>, window_params = [{transform_indices = @transform_0, window_bounds = array<i64: 1, 4, 256>}, {pipeline_mode = #tpu.pipeline_mode<synchronous>, transform_indices = @transform_1, window_bounds = array<i64: 256, 50>}, {pipeline_mode = #tpu.pipeline_mode<synchronous>, transform_indices = @transform_2, window_bounds = array<i64: 32, 4>}, {pipeline_mode = #tpu.pipeline_mode<synchronous>, transform_indices = @transform_3, window_bounds = array<i64: 32, 1>}, {pipeline_mode = #tpu.pipeline_mode<synchronous>, transform_indices = @transform_4, window_bounds = array<i64: 32, 50>}, {pipeline_mode = #tpu.pipeline_mode<synchronous>, transform_indices = @transform_5, window_bounds = array<i64: 50, 256>}, {transform_indices = @transform_6, window_bounds = array<i64: 1, 36, 256>}]} {
    %c0 = arith.constant 0 : index
    %c0_0 = arith.constant 0 : index
    %c0_1 = arith.constant 0 : index
    %0 = vector.load %arg1[%c0, %c0_0, %c0_1] : memref<1x4x256xf32, #tpu.memory_space<vmem>>, vector<1x4x256xf32>
    %1 = vector.shape_cast %0 : vector<1x4x256xf32> to vector<4x256xf32>
    %c0_2 = arith.constant 0 : index
    %c0_3 = arith.constant 0 : index
    %c0_4 = arith.constant 0 : index
    %2 = vector.load %arg7[%c0_2, %c0_3, %c0_4] : memref<1x36x256xf32, #tpu.memory_space<vmem>>, vector<1x4x256xf32>
    %3 = vector.shape_cast %2 : vector<1x4x256xf32> to vector<4x256xf32>
    %4 = vector.shape_cast %1 : vector<4x256xf32> to vector<1x4x256xf32>
    tpu.vector_store %arg7[%c0_2, %c0_3, %c0_4], %4 {strides = array<i32>} : memref<1x36x256xf32, #tpu.memory_space<vmem>>, vector<1x4x256xf32>,
    %5 = arith.truncf %1 : vector<4x256xf32> to vector<4x256xbf16>
    %c0_5 = arith.constant 0 : index
    %c0_6 = arith.constant 0 : index
    %6 = vector.load %arg2[%c0_5, %c0_6] : memref<256x50xbf16, #tpu.memory_space<vmem>>, vector<256x50xbf16>
    %cst = arith.constant dense<0.000000e+00> : vector<4x50xf32>
    %7 = tpu.matmul %5, %6, %cst {dimension_numbers = #tpu.dot_dimension_numbers<[1], [0], [0], [1], [0, 0, 1, 1], [], []>} : vector<4x256xbf16>, vector<256x50xbf16>, vector<4x50xf32> -> vector<4x50xf32>
    %c0_7 = arith.constant 0 : index
    %c0_8 = arith.constant 0 : index
    %8 = vector.load %arg3[%c0_7, %c0_8] : memref<32x4xbf16, #tpu.memory_space<vmem>>, vector<32x4xbf16>
    %9 = arith.truncf %7 : vector<4x50xf32> to vector<4x50xbf16>
    %cst_9 = arith.constant dense<0.000000e+00> : vector<32x50xf32>
    %10 = tpu.matmul %8, %9, %cst_9 {dimension_numbers = #tpu.dot_dimension_numbers<[1], [0], [0], [1], [0, 0, 1, 1], [], []>} : vector<32x4xbf16>, vector<4x50xbf16>, vector<32x50xf32> -> vector<32x50xf32>
    %c0_10 = arith.constant 0 : index
    %c0_11 = arith.constant 0 : index
    %11 = vector.load %arg4[%c0_10, %c0_11] : memref<32x1xf32, #tpu.memory_space<vmem>>, vector<32x1xf32>
    %12 = vector.broadcast %11 : vector<32x1xf32> to vector<32x50xf32>
    %13 = arith.addf %10, %12 : vector<32x50xf32>
    %cst_12 = arith.constant 0.000000e+00 : f32
    %14 = vector.broadcast %cst_12 : f32 to vector<32x50xf32>
    %15 = arith.maximumf %13, %14 : vector<32x50xf32>
    %c0_13 = arith.constant 0 : index
    %c0_14 = arith.constant 0 : index
    %16 = vector.load %arg5[%c0_13, %c0_14] : memref<32x50xf32, #tpu.memory_space<vmem>>, vector<32x50xf32>
    %17 = arith.mulf %15, %16 : vector<32x50xf32>
    %18 = arith.truncf %17 : vector<32x50xf32> to vector<32x50xbf16>
    %c0_15 = arith.constant 0 : index
    %c0_16 = arith.constant 0 : index
    %19 = vector.load %arg6[%c0_15, %c0_16] : memref<50x256xbf16, #tpu.memory_space<vmem>>, vector<50x256xbf16>
    %cst_17 = arith.constant dense<0.000000e+00> : vector<32x256xf32>
    %20 = tpu.matmul %18, %19, %cst_17 {dimension_numbers = #tpu.dot_dimension_numbers<[1], [0], [0], [1], [0, 0, 1, 1], [], []>} : vector<32x50xbf16>, vector<50x256xbf16>, vector<32x256xf32> -> vector<32x256xf32>
    %c0_18 = arith.constant 0 : index
    %c4 = arith.constant 4 : index
    %c0_19 = arith.constant 0 : index
    %21 = vector.load %arg7[%c0_18, %c4, %c0_19] : memref<1x36x256xf32, #tpu.memory_space<vmem>>, vector<1x32x256xf32>
    %22 = vector.shape_cast %21 : vector<1x32x256xf32> to vector<32x256xf32>
    %23 = vector.shape_cast %20 : vector<32x256xf32> to vector<1x32x256xf32>
    tpu.vector_store %arg7[%c0_18, %c4, %c0_19], %23 {strides = array<i32>} : memref<1x36x256xf32, #tpu.memory_space<vmem>>, vector<1x32x256xf32>,
    return
  }
  func.func @transform_0(%arg0: i32) -> (i32, i32, i32) {
    %c0_i32 = arith.constant 0 : i32
    %c0_i32_0 = arith.constant 0 : i32
    %c0_i32_1 = arith.constant 0 : i32
    return %arg0, %c0_i32, %c0_i32_0 : i32, i32, i32
  }
  func.func @transform_1(%arg0: i32) -> (i32, i32) {
    %c0_i32 = arith.constant 0 : i32
    %c0_i32_0 = arith.constant 0 : i32
    %c0_i32_1 = arith.constant 0 : i32
    return %c0_i32, %c0_i32_0 : i32, i32
  }
  func.func @transform_2(%arg0: i32) -> (i32, i32) {
    %c0_i32 = arith.constant 0 : i32
    %c0_i32_0 = arith.constant 0 : i32
    %c0_i32_1 = arith.constant 0 : i32
    return %c0_i32, %c0_i32_0 : i32, i32
  }
  func.func @transform_3(%arg0: i32) -> (i32, i32) {
    %c0_i32 = arith.constant 0 : i32
    %c0_i32_0 = arith.constant 0 : i32
    %c0_i32_1 = arith.constant 0 : i32
    return %c0_i32, %c0_i32_0 : i32, i32
  }
  func.func @transform_4(%arg0: i32) -> (i32, i32) {
    %c0_i32 = arith.constant 0 : i32
    %c0_i32_0 = arith.constant 0 : i32
    %c0_i32_1 = arith.constant 0 : i32
    return %c0_i32, %c0_i32_0 : i32, i32
  }
  func.func @transform_5(%arg0: i32) -> (i32, i32) {
    %c0_i32 = arith.constant 0 : i32
    %c0_i32_0 = arith.constant 0 : i32
    %c0_i32_1 = arith.constant 0 : i32
    return %c0_i32, %c0_i32_0 : i32, i32
  }
  func.func @transform_6(%arg0: i32) -> (i32, i32, i32) {
    %c0_i32 = arith.constant 0 : i32
    %c0_i32_0 = arith.constant 0 : i32
    %c0_i32_1 = arith.constant 0 : i32
    return %arg0, %c0_i32, %c0_i32_0 : i32, i32, i32
  }
}

</mosaic_0001>

<bundles_post_ra>
// kernel: tpu_custom_call.1
= control target key start
LH: loop header
LB: loop body
LE: loop exit
PB: predicated region body
PF: predicated region fallthrough
CT: control target
= control target key end

     0   :  { %s892_s21 = smov 0   ;;  %s1054_s0 = inlined_call_operand.vmem [shape: f32[2,4,256], index: 0, kind: input, shape index: {}]   ;;  %s1055_s1 = inlined_call_operand.vmem [shape: bf16[256,50], index: 1, kind: input, shape index: {}]   ;;  %s1056_s2 = inlined_call_operand.vmem [shape: bf16[32,4], index: 2, kind: input, shape index: {}]   ;;  %s1057_s3 = inlined_call_operand.vmem [shape: f32[32,1], index: 3, kind: input, shape index: {}]   ;;  %s1058_s4 = inlined_call_operand.vmem [shape: f32[32,50], index: 4, kind: input, shape index: {}]   ;;  %s1059_s5 = inlined_call_operand.vmem [shape: bf16[50,256], index: 5, kind: input, shape index: {}]   ;;  %s1060_s6 = inlined_call_operand.vmem [shape: f32[2,36,256], index: 6, kind: output, shape index: {}]  }
   0x1 LB: > { %s698_s22 = sadd.s32 4294967295, %s854_s21   ;;  %p702_p0 = scmp.ge.s32.totalorder %s854_s21, 1  ;;  %s854_s21 = sphi %s892_s21, %s16_s21  }
   0x2   : > { %p212_p1 = scmp.lt.s32.totalorder %s854_s21, 3 }
   0x4   : > { %p213_p2 = pnand %p702_p0, %p212_p1 }
   0x5   : > { %p242_p3 = scmp.lt.s32.totalorder (!%p213_p2), %s698_s22, 1 }
   0x6   : > { %216 = sbr.rel (%p213_p2) target bundleno = 482 (0x1e2), region = 44 }
   0xb   : > { %v818_v0 = vld [vmem:[%s1055_s1 + $0x38] sm:$0xff]  ;;  %v817_v2 = vld [vmem:[%s1055_s1 + $0x30] sm:$0xff]  ;;  %s1062_s22 = smov (!%p242_p3, %s698_s22), 1  ;;  %v816_v4 = vld [vmem:[%s1055_s1 + $0x28] sm:$0xff]  ;;  %v856_v24 = vmov 0   ;;  %vm469_vm0 = vcmask 1041408  }
   0xc   : > { %v826_v1 = vld [vmem:[%s1055_s1 + $0x78] sm:$0xff]  ;;  %397 = vmatpush.bf16.msra.mxu0 %v818_v0  ;;  %v825_v3 = vld [vmem:[%s1055_s1 + $0x70] sm:$0xff]  ;;  %s810_s7 = sshll.u32 %s1062_s22, 3  ;;  %v824_v5 = vld [vmem:[%s1055_s1 + $0x68] sm:$0xff]  ;;  %846 = vset.pattern.permute.xlu0 %v856_v24  ;;  %vm462_vm1 = vcmask 31744   ;;  %s836_s27 = smul.u32 80, %s1062_s22 }
   0xd   : > { %410 = vmatpush.bf16.msra.mxu1 %v826_v1  ;;  %s246_s10 = scalar_lea.vmem %s1054_s0, %s810_s7  ;;  %v815_v7 = vld [vmem:[%s1055_s1 + $0x20] sm:$0xff]  ;;  %v814_v9 = vld [vmem:[%s1055_s1 + $0x18] sm:$0xff]  ;;  %v813_v13 = vld [vmem:[%s1055_s1 + $0x10] sm:$0xff]  ;;  %847 = vset.pattern.permute.xlu1 %v856_v24  ;;  %vm555_vm2 = vcmask 1040384   ;;  %vm548_vm3 = vcmask 408576   ;;  %vm608_vm4 = vcmask 1043456  }
   0xe   : > { %v253_v6 = vld [vmem:[%s246_s10] sm:$0xff]  ;;  %v822_v10 = vld [vmem:[%s1055_s1 + $0x58] sm:$0xff]  ;;  %v821_v14 = vld [vmem:[%s1055_s1 + $0x50] sm:$0xff]  ;;  %s976_s30 = scalar_lea.vmem %s1060_s6, %s836_s27 }
   0xf   : > { %255 = vst [vmem:[#allocation1] ss:$2 sm:$0xff] %v253_v6  ;;  %v823_v8 = vld [vmem:[%s1055_s1 + $0x60] sm:$0xff]  ;;  %v812_v15 = vld [vmem:[%s1055_s1 + $0x8] sm:$0xff]  ;;  %v430_v25 = vld [vmem:[%s1057_s3 + $0x10] sm:$0xff] }
  0x10   : > { %398 = vmatpush.bf16.msra.mxu0 %v817_v2  ;;  %v820_v16 = vld [vmem:[%s1055_s1 + $0x48] sm:$0xff]  ;;  %v811_v17 = vld [vmem:[%s1055_s1] sm:$0xff]  ;;  %444 = vperm.xlu1 %847, %v430_v25   ;;  %v431_v27 = vld [vmem:[%s1057_s3 + $0x18] sm:$0xff] }
  0x11   : > { %411 = vmatpush.bf16.msra.mxu1 %v825_v3  ;;  %v819_v18 = vld [vmem:[%s1055_s1 + $0x40] sm:$0xff]  ;;  %v429_v26 = vld [vmem:[%s1057_s3 + $0x8] sm:$0xff]  ;;  %v512_v37 = vld [vmem:[%s1059_s5 + $0x30] sm:$0x11] }
  0x12   : > { %v428_v23 = vld [vmem:[%s1057_s3] sm:$0xff]  ;;  %v828_v34 = vld [vmem:[%s1056_s2 + $0x8] sm:$0xff]  ;;  %v532_v38 = vunpack.c.l.b16 %v512_v37  ;;  %v533_v39 = vunpack.c.h.b16 %v512_v37  ;;  %v790_v50 = vld [vmem:[%s1059_s5 + $0x10] sm:$0xf] }
  0x13   : > { %434 = vperm.xlu0 %846, %v428_v23   ;;  %v827_v33 = vld [vmem:[%s1056_s2] sm:$0xff]  ;;  %v834_v45 = vld [vmem:[%s1059_s5 + $0x24] sm:$0xf0]  ;;  %v800_v48 = vld [vmem:[%s1059_s5 + $0x28] sm:$0xf0] }
  0x14   : > { %399 = vmatpush.bf16.msra.mxu0 %v816_v4  ;;  %v540_v40 = vpack.c.b16 %v532_v38, %v532_v38  ;;  %v541_v41 = vpack.c.b16 %v533_v39, %v533_v39  ;;  %v798_v44 = vld [vmem:[%s1059_s5 + $0x20] sm:$0xf]  ;;  %v833_v47 = vld [vmem:[%s1059_s5 + $0x24] sm:$0xf]  ;;  %v832_v51 = vld [vmem:[%s1059_s5 + $0x14] sm:$0xf0] }
  0x15   : > { %412 = vmatpush.bf16.msra.mxu1 %v824_v5  ;;  %v799_v46 = vor.u32 %v834_v45, %v798_v44  ;;  %v803_v49 = vor.u32 %v833_v47, %v800_v48  ;;  %v831_v52 = vld [vmem:[%s1059_s5 + $0x14] sm:$0xf]  ;;  %v791_v53 = vor.u32 %v832_v51, %v790_v50  ;;  %v792_v54 = vld [vmem:[%s1059_s5 + $0x18] sm:$0xf0]  ;;  %v782_v56 = vld [vmem:[%s1059_s5] sm:$0xf] }
  0x16   : > { %v256_v11 = vld.sshfl [vmem:[#allocation1] sm:$0xff pattern:$0x75316420]  ;;  %v257_v12 = vld.sshfl [vmem:[#allocation1 + $0x8] sm:$0xff pattern:$0x75316420]  ;;  %v795_v55 = vor.u32 %v831_v52, %v792_v54 }
  0x17   : > { %262 = vst [vmem:[#allocation1] ss:$2 sm:$0xff] %v253_v6  ;;  %v557_v42 = vsel %vm555_vm2, %v540_v40, 0  ;;  %v560_v43 = vsel %vm555_vm2, %v541_v41, 0  ;;  %v830_v57 = vld [vmem:[%s1059_s5 + $0x4] sm:$0xf0] }
  0x18   : > { %400 = vmatpush.bf16.msra.mxu0 %v815_v7  ;;  %449 = vperm.xlu1 %847, %v431_v27   ;;  %260 = vst [vmem:[%s976_s30] sm:$0xf] %v256_v11  ;;  %v783_v58 = vor.u32 %v830_v57, %v782_v56  ;;  %v829_v59 = vld [vmem:[%s1059_s5 + $0x4] sm:$0xf]  ;;  %v784_v60 = vld [vmem:[%s1059_s5 + $0x8] sm:$0xf0] }
  0x19   : > { %413 = vmatpush.bf16.msra.mxu1 %v823_v8  ;;  %261 = vst [vmem:[%s976_s30 + $0x8] sm:$0xf] %v257_v12  ;;  %566 = vmatpush.bf16.msra.mxu3 %v557_v42  ;;  %v787_v61 = vor.u32 %v829_v59, %v784_v60  ;;  %v496_v7 = vld [vmem:[%s1058_s4] sm:$0xff]  ;;  %v497_v8 = vld [vmem:[%s1058_s4 + $0x8] sm:$0xff] }
  0x1b   : > { %439 = vperm.xlu0 %846, %v429_v26  }
  0x1c   : > { %401 = vmatpush.bf16.msra.mxu0 %v814_v9 }
  0x1d   : > { %414 = vmatpush.bf16.msra.mxu1 %v822_v10  ;;  %567 = vmatpush.bf16.msra.mxu3 %v799_v46 }
  0x1e   : > { %v263_v19 = vld.sshfl [vmem:[#allocation1] sm:$0xff pattern:$0x75316420]  ;;  %v264_v20 = vld.sshfl [vmem:[#allocation1 + $0x8] sm:$0xff pattern:$0x75316420] }
  0x1f   : > { %v267_v21 = vpack.c.bf16 %v263_v19, %v263_v19  ;;  %v268_v22 = vpack.c.bf16 %v264_v20, %v264_v20  ;;  %v498_v19 = vld [vmem:[%s1058_s4 + $0x10] sm:$0xff]  ;;  %v499_v20 = vld [vmem:[%s1058_s4 + $0x18] sm:$0xff] }
  0x20   : > { %402 = vmatpush.bf16.msra.mxu0 %v813_v13 }
  0x21   : > { %415 = vmatpush.bf16.msra.mxu1 %v821_v14  ;;  %568 = vmatpush.bf16.msra.mxu3 %v791_v53 }
  0x24   : > { %403 = vmatpush.bf16.msra.mxu0 %v812_v15 }
  0x25   : > { %416 = vmatpush.bf16.msra.mxu1 %v820_v16  ;;  %569 = vmatpush.bf16.msra.mxu3 %v783_v58 }
  0x28   : > { %404 = vmatpush.bf16.msra.mxu0 %v811_v17 }
  0x29   : > { %417 = vmatpush.bf16.msra.mxu1 %v819_v18 }
  0x2b   : > { %405 = vmatmul.bf16.vlgmr.msra.gmra.mxu0 %v267_v21 }
  0x2c   : > { %418 = vmatmul.bf16.vlgmr.msra.gmra.mxu1 %v268_v22 }
  0x82   : > { %v445_v1 = vpop.permute.xlu1 %444 }
  0x85   : > { %v435_v62 = vpop.permute.xlu0 %434 }
  0x8a   : > { %v450_v13 = vpop.permute.xlu1 %449 }
  0x8d   : > { %v440_v3 = vpop.permute.xlu0 %439 }
  0xa8   : > { %v406_v28 = vpop.f32.mrf.mxu0 }
  0xa9   : > { %v419_v29 = vpop.f32.mrf.mxu1 }
  0xaa   : > { %v420_v30 = vadd.f32 %v419_v29, %v406_v28 }
  0xac   : > { %v427_v31 = vpack.c.bf16 %v420_v30, %v420_v30 }
  0xae   : > { %v471_v32 = vsel %vm469_vm0, %v427_v31, 0 }
  0xaf   : > { %480 = vmatpush.bf16.msrb.mxu0 %v471_v32  ;;  %835 = vmatpush.bf16.msra.mxu2 %v471_v32 }
  0xb0   : > { %v408_v35 = vpop.f32.mrf.mxu0 }
  0xb1   : > { %v421_v36 = vpop.f32.mrf.mxu1 }
  0xb2   : > { %778 = vmatmul.msk.bf16.vlgmr.msrb.gmra.mxu0 %vm462_vm1, %v827_v33  ;;  %779 = vmatmul.msk.bf16.vlgmr.msra.gmra.mxu2 %vm462_vm1, %v828_v34 }
  0xb3   : > { %585 = vmatpush.bf16.msrb.mxu2 %v560_v43 }
  0xb7   : > { %586 = vmatpush.bf16.msrb.mxu2 %v803_v49 }
  0xbb   : > { %587 = vmatpush.bf16.msrb.mxu2 %v795_v55 }
  0xbf   : > { %588 = vmatpush.bf16.msrb.mxu2 %v787_v61 }
 0x12f   : > { %v482_v63 = vpop.f32.mrf.mxu0 }
 0x130   : > { %v483_v0 = vadd.f32 %v482_v63, %v435_v62 }
 0x132   : > { %v492_v5 = vmax.f32 %v483_v0, 0.0 }
 0x134   : > { %v500_v10 = vmul.f32 %v496_v7, %v492_v5 }
 0x135   : > { %v487_v2 = vpop.f32.mrf.mxu2 }
 0x136   : > { %v488_v15 = vadd.f32 %v487_v2, %v445_v1 }
 0x137   : > { %v484_v4 = vpop.f32.mrf.mxu0 }
 0x138   : > { %v485_v6 = vadd.f32 %v484_v4, %v440_v3  ;;  %v494_v17 = vmax.f32 %v488_v15, 0.0 }
 0x13a   : > { %v493_v9 = vmax.f32 %v485_v6, 0.0  ;;  %v502_v21 = vmul.f32 %v498_v19, %v494_v17 }
 0x13c   : > { %v501_v11 = vmul.f32 %v497_v8, %v493_v9 }
 0x13d   : > { %v489_v14 = vpop.f32.mrf.mxu2 }
 0x13e   : > { %v504_v12 = vpack.c.bf16 %v501_v11, %v500_v10  ;;  %v490_v16 = vadd.f32 %v489_v14, %v450_v13 }
 0x140   : > { %804 = vmatmul.msk.bf16.vlgmr.msra.gmra.mxu3 %vm548_vm3, %v504_v12  ;;  %806 = vmatmul.msk.bf16.vlgmr.msrb.gmra.mxu2 %vm548_vm3, %v504_v12  ;;  %v495_v18 = vmax.f32 %v490_v16, 0.0 }
 0x142   : > { %v503_v22 = vmul.f32 %v499_v20, %v495_v18 }
 0x144   : > { %v505_v23 = vpack.c.bf16 %v503_v22, %v502_v21 }
 0x150   : > { %805 = vmatmul.msk.bf16.gmra.mxu3 %vm548_vm3, %v505_v23  ;;  %807 = vmatmul.msk.bf16.gmra.mxu2 %vm548_vm3, %v505_v23 }
 0x1c3   : > { %v571_v24 = vpop.f32.mrf.mxu3  ;;  %v590_v25 = vpop.f32.mrf.mxu2 }
 0x1c4   : > { %v609_v26 = vrot.slane %v571_v24, 4  ;;  %v610_v27 = vrot.slane %v590_v25, 4 }
 0x1c6   : > { %633 = vst [vmem:[%s976_s30] sm:$0xf0] %v609_v26 }
 0x1c7   : > { %634 = vst [vmem:[%s976_s30 + $0x8] sm:$0xf0] %v610_v27 }
 0x1cb   : > { %v573_v28 = vpop.f32.mrf.mxu3  ;;  %v592_v29 = vpop.f32.mrf.mxu2 }
 0x1cc   : > { %v611_v30 = vrot.slane %v573_v28, 4  ;;  %v613_v31 = vrot.slane %v592_v29, 4 }
 0x1ce   : > { %v612_v32 = vsel %vm608_vm4, %v609_v26, %v611_v30  ;;  %v614_v33 = vsel %vm608_vm4, %v610_v27, %v613_v31 }
 0x1cf   : > { %635 = vst [vmem:[%s976_s30 + $0x10] sm:$0xff] %v612_v32 }
 0x1d0   : > { %636 = vst [vmem:[%s976_s30 + $0x18] sm:$0xff] %v614_v33 }
 0x1d3   : > { %v576_v34 = vpop.f32.mrf.mxu3  ;;  %v595_v35 = vpop.f32.mrf.mxu2 }
 0x1d4   : > { %v615_v36 = vrot.slane %v576_v34, 4  ;;  %v617_v37 = vrot.slane %v595_v35, 4 }
 0x1d6   : > { %v616_v38 = vsel %vm608_vm4, %v611_v30, %v615_v36  ;;  %v618_v39 = vsel %vm608_vm4, %v613_v31, %v617_v37 }
 0x1d7   : > { %637 = vst [vmem:[%s976_s30 + $0x20] sm:$0xff] %v616_v38 }
 0x1d8   : > { %638 = vst [vmem:[%s976_s30 + $0x28] sm:$0xff] %v618_v39 }
 0x1db   : > { %v578_v40 = vpop.f32.mrf.mxu3  ;;  %v597_v41 = vpop.f32.mrf.mxu2 }
 0x1dc   : > { %v619_v42 = vrot.slane %v578_v40, 4  ;;  %v621_v43 = vrot.slane %v597_v41, 4 }
 0x1de   : > { %v620_v44 = vsel %vm608_vm4, %v615_v36, %v619_v42  ;;  %641 = vst [vmem:[%s976_s30 + $0x40] sm:$0xf] %v619_v42  ;;  %v622_v45 = vsel %vm608_vm4, %v617_v37, %v621_v43 }
 0x1df   : > { %639 = vst [vmem:[%s976_s30 + $0x30] sm:$0xff] %v620_v44 }
 0x1e0   : > { %640 = vst [vmem:[%s976_s30 + $0x38] sm:$0xff] %v622_v45 }
 0x1e1   : > { %642 = vst [vmem:[%s976_s30 + $0x48] sm:$0xf] %v621_v43 }
 0x1e2 PF: > { %s16_s21 = sadd.s32 1, %s854_s21  }
 0x1e3   : > { %p13_p4 = scmp.ge.s32.totalorder %s16_s21, 4  }
 0x1e5   :  { %15 = sbr.rel (!%p13_p4) target bundleno = 1 (0x1), region = 74 }

</bundles_post_ra>
